<compile_context>
chip_gen: v7x
topology: tpu7x:2x2x1
jax: 0.10.0
libtpu: 0.0.40
codegen_flags: <defaults>
</compile_context>

<pallas_src>
import functools

import jax
import jax.numpy as jnp
from jax.experimental import pallas as pl
from jax.experimental.pallas import tpu as pltpu


# ---------------------------------------------------------------------------
# Kernel
# ---------------------------------------------------------------------------
def _apply_act(out, act):
    if act == "relu":
        return jnp.maximum(out, 0.0)
    if act == "tanh":
        return jnp.tanh(out)
    if act == "sigmoid":
        return jax.nn.sigmoid(out)
    return out


def _linear_kernel(*refs, act, isbias, nk):
    """Tiled matmul + bias + activation. Grid = (M/tm, N/tn, K/tk).

    Specialized at trace time on (isbias, nk):
      nk == 1 : no accumulator scratch; single dot -> (+bias) -> act -> store.
      nk  > 1 : f32 accumulator in VMEM, initialized with the bias at k == 0,
                finalized (act + cast + store) on the last k step.
    """
    if nk == 1:
        if isbias:
            x_ref, w_ref, b_ref, o_ref = refs
        else:
            x_ref, w_ref, o_ref = refs
            b_ref = None
        out = jnp.dot(x_ref[...], w_ref[...], preferred_element_type=jnp.float32)
        if isbias:
            out = out + b_ref[...].astype(jnp.float32)
        o_ref[...] = _apply_act(out, act).astype(o_ref.dtype)
        return

    if isbias:
        x_ref, w_ref, b_ref, o_ref, acc_ref = refs
    else:
        x_ref, w_ref, o_ref, acc_ref = refs
        b_ref = None

    k = pl.program_id(2)

    @pl.when(k == 0)
    def _():
        if isbias:
            # Bias folded into the accumulator init: saves a zeros fill and a
            # full tm x tn VPU add at finalize.
            acc_ref[...] = jnp.broadcast_to(
                b_ref[...].astype(jnp.float32), acc_ref.shape
            )
        else:
            acc_ref[...] = jnp.zeros_like(acc_ref)

    acc_ref[...] += jnp.dot(
        x_ref[...], w_ref[...], preferred_element_type=jnp.float32
    )

    @pl.when(k == nk - 1)
    def _():
        o_ref[...] = _apply_act(acc_ref[...], act).astype(o_ref.dtype)


# ---------------------------------------------------------------------------
# Wrapper
# ---------------------------------------------------------------------------
def _round_up(a, m):
    return ((a + m - 1) // m) * m


def _vmem_capacity_bytes():
    try:
        return int(pltpu.get_tpu_info().vmem_capacity_bytes)
    except Exception:
        return 64 * 1024 * 1024  # conservative (v7x per-TC VMEM)


def _pick_tile(dim, max_tile, granule, min_tile):
    """Pick (tile, padded_dim) minimizing padding waste.

    If the dim fits in one block, use the full extent (no padding needed:
    full-extent block dims are always legal). Otherwise search tile sizes
    (multiples of `granule`, all (8,128)-legal) for the one that pads `dim`
    the least, preferring the largest such tile.
    """
    if dim <= max_tile:
        return dim, dim
    min_tile = min(min_tile, max_tile)
    best_t, best_pad = None, None
    t = min_tile
    while t <= max_tile:
        padded = _round_up(dim, t)
        if best_pad is None or padded <= best_pad:  # ties -> larger tile
            best_t, best_pad = t, padded
        t += granule
    return best_t, best_pad


def _xla_fastpath(x, weight, bias, act, isbias):
    out = jnp.dot(x, weight, preferred_element_type=jnp.float32)
    if isbias:
        out = out + bias.astype(jnp.float32)
    return _apply_act(out, act).astype(x.dtype)


def linear_forward(x, weight, bias=None, *, act="relu", isbias=1,
                   tm_max=None, tn_max=None, tk_max=None,
                   use_bf16=None, force_pallas=False):
    """x: (M, ind), weight: (ind, outd), bias: (outd,) or None. Returns (M, outd)."""
    M, K = x.shape
    K2, N = weight.shape
    assert K == K2
    if isbias and bias is None:
        raise ValueError("isbias=1 requires a bias array")
    out_dtype = x.dtype

    # --- Tiny problems: pallas launch + wrapper passes dominate; XLA's fused
    # dot+bias+act is strictly faster. (force_pallas bypasses for testing.)
    if not force_pallas and M <= 128 and N <= 128 and K <= 256:
        return _xla_fastpath(x, weight, bias, act, isbias)

    # --- Generation-aware defaults (VMEM capacity distinguishes v5e/v6e vs v7x).
    vmem_cap = _vmem_capacity_bytes()
    big_vmem = vmem_cap >= 100 * 1024 * 1024       # v5e / v6e (128 MiB)
    if tm_max is None:
        tm_max = 512 if big_vmem else 256
    if tn_max is None:
        tn_max = 1024 if big_vmem else 512
    if tk_max is None:
        tk_max = 512

    # --- bf16 MXU inputs by default when x is f32; accumulation stays f32.
    if use_bf16 is None:
        use_bf16 = (x.dtype == jnp.float32)
    in_dtype = jnp.bfloat16 if (use_bf16 and x.dtype == jnp.float32) else x.dtype

    # --- Tile selection. Full-extent blocks (no padding) whenever a dim fits
    # in a single tile; otherwise pick a tile minimizing padding waste.
    tm, Mp = _pick_tile(M, tm_max, granule=32, min_tile=128)
    tn, Np = _pick_tile(N, tn_max, granule=128, min_tile=128)
    tk, Kp = _pick_tile(K, tk_max, granule=128, min_tile=128)
    nk = Kp // tk

    # --- v7x megacore: make sure both TensorCores get work when the (M, N)
    # grid would collapse to a single block for a non-trivial problem.
    if (Mp // tm) * (Np // tn) == 1 and tm * tn >= 256 * 256:
        if tn % 256 == 0:
            tn //= 2          # still a multiple of 128, Np unchanged
        elif tm % 16 == 0:
            tm //= 2          # still a multiple of 8, Mp unchanged

    # --- Cast (bf16) and pad only when actually required; when a pad is
    # unavoidable the cast happens first so the pad writes narrow elements.
    xk = x.astype(in_dtype)
    wk = weight.astype(in_dtype)
    if (Mp, Kp) != (M, K):
        xk = jnp.pad(xk, ((0, Mp - M), (0, Kp - K)))
    if (Kp, Np) != (K, N):
        wk = jnp.pad(wk, ((0, Kp - K), (0, Np - N)))

    operands = [xk, wk]
    in_specs = [
        pl.BlockSpec((tm, tk), lambda i, j, k: (i, k)),
        pl.BlockSpec((tk, tn), lambda i, j, k: (k, j)),
    ]
    if isbias:
        b2 = bias.astype(jnp.float32).reshape(1, N)
        if Np != N:
            b2 = jnp.pad(b2, ((0, 0), (0, Np - N)))
        operands.append(b2)
        in_specs.append(pl.BlockSpec((1, tn), lambda i, j, k: (0, j)))

    scratch_shapes = [] if nk == 1 else [pltpu.VMEM((tm, tn), jnp.float32)]

    # --- VMEM budget: double-buffered in/out tiles + accumulator, 2x headroom,
    # clamped to 75% of this generation's physical VMEM.
    in_item = jnp.dtype(in_dtype).itemsize
    out_item = jnp.dtype(out_dtype).itemsize
    bytes_needed = (
        2 * (tm * tk + tk * tn) * in_item           # double-buffered x/w tiles
        + 2 * tm * tn * out_item                    # double-buffered out tile
        + (tm * tn * 4 if nk > 1 else 0)            # f32 accumulator
        + (2 * tn * 4 if isbias else 0)             # bias tile (f32)
    )
    vmem_limit = int(min(max(2 * bytes_needed, 32 * 1024 * 1024),
                         int(0.75 * vmem_cap)))

    cost = pl.CostEstimate(
        flops=2 * Mp * Np * Kp,
        transcendentals=Mp * Np if act in ("tanh", "sigmoid") else 0,
        bytes_accessed=(Mp * Kp * in_item + Kp * Np * in_item
                        + Mp * Np * out_item
                        + (Np * 4 if isbias else 0)),
    )

    kernel = functools.partial(_linear_kernel, act=act, isbias=isbias, nk=nk)

    out = pl.pallas_call(
        kernel,
        out_shape=jax.ShapeDtypeStruct((Mp, Np), out_dtype),
        grid_spec=pltpu.PrefetchScalarGridSpec(
            num_scalar_prefetch=0,
            grid=(Mp // tm, Np // tn, nk),
            in_specs=in_specs,
            out_specs=pl.BlockSpec((tm, tn), lambda i, j, k: (i, j)),
            scratch_shapes=scratch_shapes,
        ),
        compiler_params=pltpu.CompilerParams(
            dimension_semantics=("parallel", "parallel", "arbitrary"),
            vmem_limit_bytes=vmem_limit,
        ),
        cost_estimate=cost,
    )(*operands)

    if (Mp, Np) != (M, N):
        out = out[:M, :N]
    return out


# ---------------------------------------------------------------------------
# Self-test
# ---------------------------------------------------------------------------
if __name__ == "__main__":
    # Module config: Linear(ind=32, outd=16, act='relu', isbias=1)
    ind, outd = 32, 16
    batch, seq = 2, 8

    key = jax.random.PRNGKey(0)
    kx, kw, kb = jax.random.split(key, 3)

    # torch.rand -> uniform [0, 1)
    weight = jax.random.uniform(kw, (ind, outd), dtype=jnp.float32)
    bias = jax.random.uniform(kb, (outd,), dtype=jnp.float32)
    x = jax.random.normal(kx, (batch, seq, ind), dtype=jnp.float32)

    # torch.matmul on (B, S, ind) @ (ind, outd) == flatten leading dims.
    x2d = x.reshape(-1, ind)
    ref = jnp.maximum(jnp.matmul(x, weight) + bias, 0.0)

    # 1) Default path: tiny shape -> fused XLA fast path (exact).
    out_default = linear_forward(x2d, weight, bias, act="relu", isbias=1)
    out_default = jax.block_until_ready(out_default).reshape(batch, seq, outd)
    assert out_default.shape == (batch, seq, outd)
    assert jnp.allclose(out_default, ref, atol=1e-5, rtol=1e-5)

    # 2) Forced Pallas path, f32 operands -> exercises the kernel, tight check.
    out_pallas = linear_forward(x2d, weight, bias, act="relu", isbias=1,
                                force_pallas=True, use_bf16=False)
    out_pallas = jax.block_until_ready(out_pallas).reshape(batch, seq, outd)
    assert jnp.allclose(out_pallas, ref, atol=1e-5, rtol=1e-5)

    # 3) Forced Pallas path with default bf16 MXU inputs (f32 accumulation).
    out_bf16 = linear_forward(x2d, weight, bias, act="relu", isbias=1,
                              force_pallas=True)
    out_bf16 = jax.block_until_ready(out_bf16).reshape(batch, seq, outd)
    assert jnp.allclose(out_bf16, ref, atol=5e-2, rtol=5e-2)

    # 4) Larger shape exercising the nk > 1 accumulator path (tanh, no bias).
    M2, K2, N2 = 192, 1280, 384
    kx2, kw2 = jax.random.split(jax.random.PRNGKey(1))
    x_big = jax.random.normal(kx2, (M2, K2), dtype=jnp.float32)
    w_big = jax.random.normal(kw2, (K2, N2), dtype=jnp.float32) / 32.0
    out_big = linear_forward(x_big, w_big, None, act="tanh", isbias=0,
                             force_pallas=True, use_bf16=False)
    out_big = jax.block_until_ready(out_big)
    ref_big = jnp.tanh(jnp.matmul(x_big, w_big))
    assert out_big.shape == (M2, N2)
    assert jnp.allclose(out_big, ref_big, atol=5e-3, rtol=5e-3)

    print("KERNEL_OK")
</pallas_src>

<mosaic_0001>
module attributes {stable_mosaic.version = 11 : i64} {
  func.func @_linear_kernel(%arg0: i32, %arg1: i32, %arg2: i32, %arg3: memref<16x32xf32, #tpu.memory_space<vmem>>, %arg4: memref<32x16xf32, #tpu.memory_space<vmem>>, %arg5: memref<1x16xf32, #tpu.memory_space<vmem>>, %arg6: memref<16x16xf32, #tpu.memory_space<vmem>>) attributes {dimension_semantics = [#tpu.dimension_semantics<parallel>, #tpu.dimension_semantics<parallel>, #tpu.dimension_semantics<arbitrary>], iteration_bounds = array<i64: 1, 1, 1>, scalar_prefetch = 0 : i64, scratch_operands = 0 : i64, tpu.core_type = #tpu.core_type<tc>, window_params = [{transform_indices = @transform_0, window_bounds = array<i64: 16, 32>}, {transform_indices = @transform_1, window_bounds = array<i64: 32, 16>}, {transform_indices = @transform_2, window_bounds = array<i64: 1, 16>}, {transform_indices = @transform_3, window_bounds = array<i64: 16, 16>}]} {
    %c0 = arith.constant 0 : index
    %c0_0 = arith.constant 0 : index
    %0 = vector.load %arg3[%c0, %c0_0] : memref<16x32xf32, #tpu.memory_space<vmem>>, vector<16x32xf32>
    %c0_1 = arith.constant 0 : index
    %c0_2 = arith.constant 0 : index
    %1 = vector.load %arg4[%c0_1, %c0_2] : memref<32x16xf32, #tpu.memory_space<vmem>>, vector<32x16xf32>
    %cst = arith.constant dense<0.000000e+00> : vector<16x16xf32>
    %2 = tpu.matmul %0, %1, %cst {dimension_numbers = #tpu.dot_dimension_numbers<[1], [0], [0], [1], [0, 0, 1, 1], [], []>} : vector<16x32xf32>, vector<32x16xf32>, vector<16x16xf32> -> vector<16x16xf32>
    %c0_3 = arith.constant 0 : index
    %c0_4 = arith.constant 0 : index
    %3 = vector.load %arg5[%c0_3, %c0_4] : memref<1x16xf32, #tpu.memory_space<vmem>>, vector<1x16xf32>
    %4 = vector.broadcast %3 : vector<1x16xf32> to vector<16x16xf32>
    %5 = arith.addf %2, %4 : vector<16x16xf32>
    %cst_5 = arith.constant 0.000000e+00 : f32
    %6 = vector.broadcast %cst_5 : f32 to vector<16x16xf32>
    %7 = arith.maximumf %5, %6 : vector<16x16xf32>
    %c0_6 = arith.constant 0 : index
    %c0_7 = arith.constant 0 : index
    %8 = vector.load %arg6[%c0_6, %c0_7] : memref<16x16xf32, #tpu.memory_space<vmem>>, vector<16x16xf32>
    tpu.vector_store %arg6[%c0_6, %c0_7], %7 {strides = array<i32>} : memref<16x16xf32, #tpu.memory_space<vmem>>, vector<16x16xf32>,
    return
  }
  func.func @transform_0(%arg0: i32, %arg1: i32, %arg2: i32) -> (i32, i32) {
    %c0_i32 = arith.constant 0 : i32
    return %arg0, %arg2 : i32, i32
  }
  func.func @transform_1(%arg0: i32, %arg1: i32, %arg2: i32) -> (i32, i32) {
    %c0_i32 = arith.constant 0 : i32
    return %arg2, %arg1 : i32, i32
  }
  func.func @transform_2(%arg0: i32, %arg1: i32, %arg2: i32) -> (i32, i32) {
    %c0_i32 = arith.constant 0 : i32
    %c0_i32_0 = arith.constant 0 : i32
    return %c0_i32, %arg1 : i32, i32
  }
  func.func @transform_3(%arg0: i32, %arg1: i32, %arg2: i32) -> (i32, i32) {
    %c0_i32 = arith.constant 0 : i32
    return %arg0, %arg1 : i32, i32
  }
}

</mosaic_0001>

<bundles_post_ra>
// kernel: tpu_custom_call.1
= control target key start
LH: loop header
LB: loop body
LE: loop exit
PB: predicated region body
PF: predicated region fallthrough
CT: control target
= control target key end

     0   :  { %vm28_vm0 = vcmask 261120   ;;  %s242_s0 = inlined_call_operand.vmem [shape: f32[16,32], index: 0, kind: input, shape index: {}]   ;;  %s243_s1 = inlined_call_operand.vmem [shape: f32[32,16], index: 1, kind: input, shape index: {}]   ;;  %s244_s2 = inlined_call_operand.vmem [shape: f32[1,16], index: 2, kind: input, shape index: {}]   ;;  %s245_s3 = inlined_call_operand.hbm [shape: f32[16,16], index: 3, kind: output, shape index: {}]  }
   0x1   :  { %v17_v0 = vld [vmem:[%s243_s1] sm:$0xff]  ;;  %v18_v1 = vld [vmem:[%s243_s1 + $0x8] sm:$0xff]  ;;  %v19_v2 = vld [vmem:[%s243_s1 + $0x10] sm:$0xff] }
   0x2   :  { %v151_v3 = vpack.c.bf16 %v18_v1, %v17_v0  ;;  %v20_v4 = vld [vmem:[%s243_s1 + $0x18] sm:$0xff]  ;;  %v15_v5 = vld [vmem:[%s242_s0] sm:$0xff] }
   0x3   :  { %v155_v6 = vpack.c.bf16 %v20_v4, %v19_v2  ;;  %148 = vmatprep.mubr.msk.f32.mxu0 %vm28_vm0, %v15_v5 }
   0x4   :  { %8 = vsyncpa [#allocation3], 0  ;;  %152 = vmatprep.subr.bf16.mxu0 %v151_v3  ;;  %v16_v7 = vld [vmem:[%s242_s0 + $0x8] sm:$0xff]  ;;  %v131_v8 = vld [vmem:[%s244_s2] ss:$0 sm:$0xff]  ;;  %s186_s1 = smov [#allocation2]  }
   0x5   :  { %154 = vmatpush3.bf16.msra.mxu0 %v151_v3  ;;  %s120_s26 = sshll.u32 %s186_s1, 4  ;;  %vm112_vm1 = vcmask 130048   ;;  %s121_s26 = int_to_ptr.vmem [resolvable:$true] %s120_s26 }
   0x6   :  { %156 = vmatprep.subr.bf16.mxu0 %v155_v6  ;;  %s162_s27 = scalar_lea.vmem %s121_s26, 256  ;;  %p167_p1 = scmp.lt.s32.totalorder %s121_s26, %s121_s26 }
   0x7   :  { %p163_p0 = scmp.ne.s32.totalorder %s121_s26, %s162_s27  ;;  %p168_p2 = scmp.lt.s32.totalorder %s162_s27, %s162_s27 }
   0x9   :  { %158 = vmatpush3.bf16.msra.mxu0 %v155_v6  ;;  %p169_p3 = por %p168_p2, %p167_p1 }
   0xb   :  { %p170_p4 = pnand %p169_p3, %p163_p0 }
   0xc   :  { %149 = vmatmul.mubr.msk.f32.vlgmr.msra.gmra.mrb[0].mxu0 %vm28_vm0, %v16_v7 }
  0xdf   :  { %v150_v9 = vpop.f32.mrb[0].mxu0 }
  0xe0   :  { %v107_v10 = vadd.f32 %v150_v9, %v131_v8  ;;  %v101_v11 = vpop.f32.mrb[1].mxu0 }
  0xe1   :  { %v102_v12 = vadd.f32 %v131_v8, %v101_v11 }
  0xe2   :  { %v111_v13 = vmax.f32 %v107_v10, 0.0 }
  0xe3   :  { %v110_v14 = vmax.f32 %v102_v12, 0.0 }
  0xe4   :  { %114 = vst.msk [vmem:[#allocation2 + $0x8] sm:$0xff] %vm112_vm1, %v111_v13 }
  0xe5   :  { %113 = vst.msk [vmem:[#allocation2] sm:$0xff] %vm112_vm1, %v110_v14 }
  0xe6   :  { %173 = shalt.err (!%p170_p4)
}
  0xe7   :  { %s174_s28 = scalar_lea.hbm %s245_s3, 256 }
  0xe8   :  { %p175_p5 = scmp.ne.s32.totalorder %s245_s3, %s174_s28  ;;  %p178_p6 = scmp.lt.u32.totalorder %s174_s28, %s245_s3 }
  0xea   :  { %p180_p7 = pnand %p178_p6, %p175_p5 }
  0xec   :  { %183 = shalt.err (!%p180_p7)
}
  0xed   :  { %s187_s6 = smov 128   ;;  %s188_s7 = smov 8  }
  0xee   :  { %126 = dma.vmem_to_hbm [thread:$0]  %s121_s26, 256, %s245_s3, [#allocation3], %s187_s6, %s187_s6, %s188_s7  }
  0xef   :  { %184 = dma.done.wait [#allocation3], 256  }
  0xf0   :  { %185 = vsyncadd [#allocation3], 4294967040 }
  0xf1   :  { %130 = vsyncpa [#allocation3], 1 }

</bundles_post_ra>
